<compile_context>
chip_gen: v5e
topology: v5e:2x2
jax: 0.10.0
libtpu: 0.0.40
codegen_flags: <defaults>
</compile_context>

<pallas_src>
import jax
import jax.numpy as jnp
from jax.experimental import pallas as pl
from jax.experimental.pallas import tpu as pltpu

POOL_SIZE = 7
NUM_ROIS = 4
SPATIAL_SCALE = 1.0 / 16.0  # kept from the module __init__; unused in forward
PP_PAD = 64                 # per-ROI pooled block padded to 64 lanes (7*7=49)


def _roi_pool_kernel(tgt_ref, img_ref, out_ref, sel_ref):
    """Fused ROI pooling as a one-hot selection matmul.

    tgt_ref: (1, R*PP_PAD) int32 VMEM   flat source-pixel index per pooled
             lane; -1 is a sentinel meaning "this lane writes 0".
    img_ref: (C, H*W)        VMEM       flattened feature map.
    out_ref: (C, R*PP_PAD)   VMEM       pooled output (lane-dense, unmasked).
    sel_ref: (H*W, R*PP_PAD) VMEM scratch one-hot selection matrix.
    """
    hw_iota = jax.lax.broadcasted_iota(jnp.int32, sel_ref.shape, 0)
    # Single aligned full-width build + store (no per-ROI misaligned slices).
    # Sentinel -1 never matches the non-negative iota -> all-zero column.
    sel_ref[...] = (hw_iota == tgt_ref[...]).astype(sel_ref.dtype)
    # Single fused selection matmul: (C, H*W) @ (H*W, R*PP_PAD).
    out_ref[...] = jnp.dot(
        img_ref[...], sel_ref[...], preferred_element_type=jnp.float32
    ).astype(out_ref.dtype)


def roi_pooling_conv(x, rois, pool_size=POOL_SIZE, num_rois=NUM_ROIS,
                     spatial_scale=SPATIAL_SCALE):
    """Mirror of RoiPoolingConv.forward.

    x    : (3, N, C, H, W)  -- mirrors `assert len(x) == 3; img = x[0]`
    rois : (1, num_rois, 4) -- integer (x, y, w, h) boxes in feature-map coords
    returns (1, num_rois, pool_size, pool_size, C), i.e. the raw .view of the
    (num_rois, C, P, P) concatenation, exactly like the PyTorch module.
    """
    assert x.shape[0] == 3
    img = x[0]                                   # (N, C, H, W)
    N, C, H, W = img.shape
    assert N == 1
    P = pool_size
    PP = P * P
    HW = H * W

    img_flat = img[0].reshape(C, HW)             # lane-dense (C, H*W)

    # --- nearest-neighbor target indices, hoisted to XLA (tiny int math) ----
    rois0 = rois[0].astype(jnp.int32)            # trunc-toward-zero == map(int,)
    xs = rois0[:, 0:1]                           # (R, 1)
    ys = rois0[:, 1:2]
    ws = rois0[:, 2:3]
    hs = rois0[:, 3:4]
    k = jnp.arange(PP, dtype=jnp.int32)
    i_p = (k // P)[None, :]                      # pooled row  (1, PP)
    j_p = (k % P)[None, :]                       # pooled col  (1, PP)
    row_src = ys + (i_p * hs) // P               # floor nearest    (R, PP)
    col_src = xs + (j_p * ws) // P               # floor nearest    (R, PP)
    valid = ((row_src >= 0) & (row_src < H) &
             (col_src >= 0) & (col_src < W) &
             (ws > 0) & (hs > 0))
    tgt = jnp.where(valid, row_src * W + col_src, -1)   # (R, PP) int32
    # Pad each ROI block 49 -> 64 lanes with the sentinel -1.
    tgt_pad = jnp.full((num_rois, PP_PAD), -1, jnp.int32).at[:, :PP].set(tgt)
    tgt_flat = tgt_pad.reshape(1, num_rois * PP_PAD)

    out = pl.pallas_call(
        _roi_pool_kernel,
        out_shape=jax.ShapeDtypeStruct((C, num_rois * PP_PAD), img.dtype),
        grid=(1,),                               # single fused step, all ROIs
        in_specs=[
            pl.BlockSpec((1, num_rois * PP_PAD), lambda i: (0, 0)),
            pl.BlockSpec((C, HW), lambda i: (0, 0)),
        ],
        out_specs=pl.BlockSpec((C, num_rois * PP_PAD), lambda i: (0, 0)),
        scratch_shapes=[pltpu.VMEM((HW, num_rois * PP_PAD), img.dtype)],
        # TODO(synk): for detector-scale H*W / C, tile the H*W reduction
        # (grid over HW slices, f32 accumulator with pl.when init/finalize,
        # axis marked "arbitrary"), add a "parallel" C-tile axis for v7x's
        # second TensorCore, and set vmem_limit_bytes / Buffered(1) so sel
        # fits v7x's 64 MiB VMEM and v5e's 16 MiB scoped default.
    )(tgt_flat, img_flat)

    # (C, R*64) -> drop lane padding -> (R, C, P, P) == torch.cat(outputs, 0)
    out = out.reshape(C, num_rois, PP_PAD)[:, :, :PP]
    out = out.reshape(C, num_rois, P, P).transpose(1, 0, 2, 3)
    # torch: .view(1, R, P, P, -1) is a raw row-major reshape
    return out.reshape(1, num_rois, P, P, -1)


def _reference(x, rois, pool_size, num_rois):
    """Pure-JAX replica of the PyTorch forward for verification."""
    img = x[0]                               # (1, C, H, W)
    rois0 = rois[0]
    outs = []
    for r in range(num_rois):
        xr, yr, wr, hr = [int(v) for v in rois0[r]]
        crop = img[:, :, yr:yr + hr, xr:xr + wr]
        ri = (jnp.arange(pool_size) * hr) // pool_size     # nearest (floor)
        ci = (jnp.arange(pool_size) * wr) // pool_size
        rs = crop[:, :, ri, :][:, :, :, ci]
        outs.append(rs)
    cat = jnp.concatenate(outs, axis=0)                    # (num_rois, C, P, P)
    return cat.reshape(1, num_rois, pool_size, pool_size, -1)


if __name__ == "__main__":
    key = jax.random.PRNGKey(0)
    k1, k2, k3 = jax.random.split(key, 3)

    C, H, W = 4, 16, 16
    x = jax.random.normal(k1, (3, 1, C, H, W), dtype=jnp.float32)
    # integer ROI boxes (x, y, w, h), guaranteed in-bounds
    xy = jax.random.randint(k2, (NUM_ROIS, 2), 0, H // 2)
    wh = jax.random.randint(k3, (NUM_ROIS, 2), 1, H // 2 + 1)
    rois = jnp.concatenate([xy, wh], axis=-1)[None].astype(jnp.int32)  # (1,R,4)

    out = roi_pooling_conv(x, rois)
    out = jax.block_until_ready(out)

    ref = _reference(x, rois, POOL_SIZE, NUM_ROIS)
    assert out.shape == (1, NUM_ROIS, POOL_SIZE, POOL_SIZE, C), out.shape
    assert jnp.allclose(out, ref, atol=1e-6), "Pallas output != reference"
    print("KERNEL_OK")
</pallas_src>

<mosaic_0001>
module attributes {stable_mosaic.version = 11 : i64} {
  func.func @_roi_pool_kernel(%arg0: i32, %arg1: memref<1x256xi32, #tpu.memory_space<vmem>>, %arg2: memref<4x256xf32, #tpu.memory_space<vmem>>, %arg3: memref<4x256xf32, #tpu.memory_space<vmem>>, %arg4: memref<256x256xf32, #tpu.memory_space<vmem>>) attributes {dimension_semantics = [#tpu.dimension_semantics<arbitrary>], iteration_bounds = array<i64: 1>, scalar_prefetch = 0 : i64, scratch_operands = 1 : i64, tpu.core_type = #tpu.core_type<tc>, window_params = [{pipeline_mode = #tpu.pipeline_mode<synchronous>, transform_indices = @transform_0, window_bounds = array<i64: 1, 256>}, {pipeline_mode = #tpu.pipeline_mode<synchronous>, transform_indices = @transform_1, window_bounds = array<i64: 4, 256>}, {pipeline_mode = #tpu.pipeline_mode<synchronous>, transform_indices = @transform_2, window_bounds = array<i64: 4, 256>}]} {
    %0 = tpu.iota {dimensions = array<i32: 0>} : vector<256x256xi32>
    %c0 = arith.constant 0 : index
    %c0_0 = arith.constant 0 : index
    %1 = vector.load %arg1[%c0, %c0_0] : memref<1x256xi32, #tpu.memory_space<vmem>>, vector<1x256xi32>
    %2 = vector.broadcast %1 : vector<1x256xi32> to vector<256x256xi32>
    %3 = arith.cmpi eq, %0, %2 : vector<256x256xi32>
    %4 = arith.extui %3 : vector<256x256xi1> to vector<256x256xi32>
    %5 = arith.sitofp %4 : vector<256x256xi32> to vector<256x256xf32>
    %c0_1 = arith.constant 0 : index
    %c0_2 = arith.constant 0 : index
    %6 = vector.load %arg4[%c0_1, %c0_2] : memref<256x256xf32, #tpu.memory_space<vmem>>, vector<256x256xf32>
    tpu.vector_store %arg4[%c0_1, %c0_2], %5 {strides = array<i32>} : memref<256x256xf32, #tpu.memory_space<vmem>>, vector<256x256xf32>,
    %c0_3 = arith.constant 0 : index
    %c0_4 = arith.constant 0 : index
    %7 = vector.load %arg2[%c0_3, %c0_4] : memref<4x256xf32, #tpu.memory_space<vmem>>, vector<4x256xf32>
    %c0_5 = arith.constant 0 : index
    %c0_6 = arith.constant 0 : index
    %8 = vector.load %arg4[%c0_5, %c0_6] : memref<256x256xf32, #tpu.memory_space<vmem>>, vector<256x256xf32>
    %cst = arith.constant dense<0.000000e+00> : vector<4x256xf32>
    %9 = tpu.matmul %7, %8, %cst {dimension_numbers = #tpu.dot_dimension_numbers<[1], [0], [0], [1], [0, 0, 1, 1], [], []>} : vector<4x256xf32>, vector<256x256xf32>, vector<4x256xf32> -> vector<4x256xf32>
    %c0_7 = arith.constant 0 : index
    %c0_8 = arith.constant 0 : index
    %10 = vector.load %arg3[%c0_7, %c0_8] : memref<4x256xf32, #tpu.memory_space<vmem>>, vector<4x256xf32>
    tpu.vector_store %arg3[%c0_7, %c0_8], %9 {strides = array<i32>} : memref<4x256xf32, #tpu.memory_space<vmem>>, vector<4x256xf32>,
    return
  }
  func.func @transform_0(%arg0: i32) -> (i32, i32) {
    %c0_i32 = arith.constant 0 : i32
    %c0_i32_0 = arith.constant 0 : i32
    %c0_i32_1 = arith.constant 0 : i32
    return %c0_i32, %c0_i32_0 : i32, i32
  }
  func.func @transform_1(%arg0: i32) -> (i32, i32) {
    %c0_i32 = arith.constant 0 : i32
    %c0_i32_0 = arith.constant 0 : i32
    %c0_i32_1 = arith.constant 0 : i32
    return %c0_i32, %c0_i32_0 : i32, i32
  }
  func.func @transform_2(%arg0: i32) -> (i32, i32) {
    %c0_i32 = arith.constant 0 : i32
    %c0_i32_0 = arith.constant 0 : i32
    %c0_i32_1 = arith.constant 0 : i32
    return %c0_i32, %c0_i32_0 : i32, i32
  }
}

</mosaic_0001>

<bundles_post_ra>
// kernel: tpu_custom_call.1
= control target key start
LH: loop header
LB: loop body
LE: loop exit
PB: predicated region body
PF: predicated region fallthrough
CT: control target
= control target key end

     0   :  { %7 = vsyncpa [#allocation4], 0  ;;  %s949_s0 = inlined_call_operand.hbm [shape: s32[1,256], index: 0, kind: input, shape index: {}]   ;;  %s950_s1 = inlined_call_operand.hbm [shape: f32[4,256], index: 1, kind: input, shape index: {}]   ;;  %s951_s2 = inlined_call_operand.hbm [shape: f32[4,256], index: 2, kind: output, shape index: {}]  }
   0x1   :  { %8 = vsyncpa [#allocation7], 0 }
   0x2   :  { %9 = vsyncpa [#allocation5], 0  ;;  %s15_s11 = sshll.u32 %s949_s0, 4  ;;  %s718_s12 = smov [#allocation3]   ;;  %s16_s11 = int_to_ptr.hbm [resolvable:$true] %s15_s11 }
   0x3   :  { %s17_s13 = sshll.u32 %s718_s12, 4  ;;  %s26_s16 = sshll.u32 %s950_s1, 4  ;;  %s18_s13 = int_to_ptr.vmem [resolvable:$true] %s17_s13  ;;  %s27_s16 = int_to_ptr.hbm [resolvable:$true] %s26_s16 }
   0x4   :  { %20 = dma.hbm_to_vmem [thread:$0]  %s16_s11, 32, %s18_s13, [#allocation4]  }
   0x5   :  { %s719_s17 = smov [#allocation6]  }
   0x6   :  { %s28_s18 = sshll.u32 %s719_s17, 4  ;;  %s29_s18 = int_to_ptr.vmem [resolvable:$true] %s28_s18 }
   0x7   :  { %31 = dma.hbm_to_vmem [thread:$0]  %s27_s16, 128, %s29_s18, [#allocation7]  }
   0x8   :  { %712 = dma.done.wait [#allocation4], 32  }
   0x9   :  { %713 = vsyncadd [#allocation4], 4294967264 }
   0xa   :  { %714 = dma.done.wait [#allocation7], 128  }
   0xb   :  { %715 = vsyncadd [#allocation7], 4294967168  ;;  %v40_v0 = vlaneseq  ;;  %v73_v6 = vld [vmem:[#allocation3] sm:$0x3]  ;;  %v332_v7 = vld [vmem:[#allocation6] sm:$0xff]  ;;  %v720_v14 = vmov 1.0  }
   0xc   :  { %v749_v8 = vperm.slane %v73_v6, 0  ;;  %v751_v9 = vperm.slane %v73_v6, 1  ;;  %398 = vst [vmem:[#allocation1] ss:$2 sm:$0xff] %v332_v7  ;;  %s721_s0 = smov [#allocation8]   ;;  %s497_s21 = sshll.u32 %s951_s2, 4  ;;  %s498_s21 = int_to_ptr.hbm [resolvable:$true] %s497_s21 }
   0xd   :  { %v743_v1 = vshrl.u32 %v40_v0, 7  ;;  %s495_s1 = sshll.u32 %s721_s0, 4  ;;  %s496_s1 = int_to_ptr.vmem [resolvable:$true] %s495_s1 }
   0xf   :  { %v56_v2 = vadd.s32 120, %v743_v1  ;;  %v72_v3 = vadd.s32 248, %v743_v1  ;;  %v55_v4 = vadd.s32 112, %v743_v1  ;;  %v71_v5 = vadd.s32 240, %v743_v1 }
  0x10   :  { %v54_v10 = vadd.s32 104, %v743_v1  ;;  %v70_v11 = vadd.s32 232, %v743_v1  ;;  %v53_v12 = vadd.s32 96, %v743_v1  ;;  %v69_v13 = vadd.s32 224, %v743_v1 }
  0x11   :  { %vm107_vm0 = vcmp.eq.s32.totalorder %v56_v2, %v751_v9  ;;  %vm139_vm1 = vcmp.eq.s32.totalorder %v72_v3, %v751_v9  ;;  %vm105_vm2 = vcmp.eq.s32.totalorder %v55_v4, %v751_v9  ;;  %vm137_vm3 = vcmp.eq.s32.totalorder %v71_v5, %v751_v9 }
  0x12   :  { %604 = vmatpush.msk.msra.mxu2 %vm107_vm0, %v720_v14  ;;  %620 = vmatpush.msk.msra.mxu3 %vm139_vm1, %v720_v14  ;;  %v52_v15 = vadd.s32 88, %v743_v1  ;;  %v68_v16 = vadd.s32 216, %v743_v1  ;;  %vm103_vm4 = vcmp.eq.s32.totalorder %v54_v10, %v751_v9  ;;  %vm135_vm5 = vcmp.eq.s32.totalorder %v70_v11, %v751_v9 }
  0x13   :  { %vm106_vm6 = vcmp.eq.s32.totalorder %v56_v2, %v749_v8  ;;  %vm138_vm7 = vcmp.eq.s32.totalorder %v72_v3, %v749_v8  ;;  %vm104_vm8 = vcmp.eq.s32.totalorder %v55_v4, %v749_v8  ;;  %vm136_vm9 = vcmp.eq.s32.totalorder %v71_v5, %v749_v8  ;;  %v399_v38 = vld.sshfl [vmem:[#allocation1] sm:$0xff pattern:$0x75316420]  ;;  %v400_v39 = vld.sshfl [vmem:[#allocation1 + $0x8] sm:$0xff pattern:$0x75316420] }
  0x14   :  { %605 = vmatpush.msk.msra.mxu2 %vm105_vm2, %v720_v14  ;;  %621 = vmatpush.msk.msra.mxu3 %vm137_vm3, %v720_v14  ;;  %vm101_vm10 = vcmp.eq.s32.totalorder %v53_v12, %v751_v9  ;;  %vm133_vm11 = vcmp.eq.s32.totalorder %v69_v13, %v751_v9  ;;  %v51_v17 = vadd.s32 80, %v743_v1  ;;  %v67_v18 = vadd.s32 208, %v743_v1 }
  0x15   :  { %572 = vmatpush.msk.msra.mxu0 %vm106_vm6, %v720_v14  ;;  %588 = vmatpush.msk.msra.mxu1 %vm138_vm7, %v720_v14  ;;  %vm102_vm12 = vcmp.eq.s32.totalorder %v54_v10, %v749_v8  ;;  %vm134_vm13 = vcmp.eq.s32.totalorder %v70_v11, %v749_v8  ;;  %vm99_vm14 = vcmp.eq.s32.totalorder %v52_v15, %v751_v9  ;;  %v50_v19 = vadd.s32 72, %v743_v1 }
  0x16   :  { %606 = vmatpush.msk.msra.mxu2 %vm103_vm4, %v720_v14  ;;  %622 = vmatpush.msk.msra.mxu3 %vm135_vm5, %v720_v14  ;;  %vm131_vm15 = vcmp.eq.s32.totalorder %v68_v16, %v751_v9  ;;  %v66_v20 = vadd.s32 200, %v743_v1  ;;  %vm100_vm0 = vcmp.eq.s32.totalorder %v53_v12, %v749_v8  ;;  %vm132_vm1 = vcmp.eq.s32.totalorder %v69_v13, %v749_v8 }
  0x17   :  { %573 = vmatpush.msk.msra.mxu0 %vm104_vm8, %v720_v14  ;;  %589 = vmatpush.msk.msra.mxu1 %vm136_vm9, %v720_v14  ;;  %vm97_vm2 = vcmp.eq.s32.totalorder %v51_v17, %v751_v9  ;;  %vm129_vm3 = vcmp.eq.s32.totalorder %v67_v18, %v751_v9  ;;  %v49_v21 = vadd.s32 64, %v743_v1  ;;  %v65_v22 = vadd.s32 192, %v743_v1 }
  0x18   :  { %607 = vmatpush.msk.msra.mxu2 %vm101_vm10, %v720_v14  ;;  %623 = vmatpush.msk.msra.mxu3 %vm133_vm11, %v720_v14  ;;  %vm98_vm4 = vcmp.eq.s32.totalorder %v52_v15, %v749_v8  ;;  %vm130_vm5 = vcmp.eq.s32.totalorder %v68_v16, %v749_v8  ;;  %vm95_vm6 = vcmp.eq.s32.totalorder %v50_v19, %v751_v9  ;;  %v48_v23 = vadd.s32 56, %v743_v1 }
  0x19   :  { %574 = vmatpush.msk.msra.mxu0 %vm102_vm12, %v720_v14  ;;  %590 = vmatpush.msk.msra.mxu1 %vm134_vm13, %v720_v14  ;;  %vm127_vm7 = vcmp.eq.s32.totalorder %v66_v20, %v751_v9  ;;  %v64_v24 = vadd.s32 184, %v743_v1  ;;  %vm96_vm8 = vcmp.eq.s32.totalorder %v51_v17, %v749_v8  ;;  %vm128_vm9 = vcmp.eq.s32.totalorder %v67_v18, %v749_v8 }
  0x1a   :  { %608 = vmatpush.msk.msra.mxu2 %vm99_vm14, %v720_v14  ;;  %624 = vmatpush.msk.msra.mxu3 %vm131_vm15, %v720_v14  ;;  %vm93_vm10 = vcmp.eq.s32.totalorder %v49_v21, %v751_v9  ;;  %vm125_vm11 = vcmp.eq.s32.totalorder %v65_v22, %v751_v9  ;;  %v47_v25 = vadd.s32 48, %v743_v1  ;;  %v63_v26 = vadd.s32 176, %v743_v1 }
  0x1b   :  { %575 = vmatpush.msk.msra.mxu0 %vm100_vm0, %v720_v14  ;;  %591 = vmatpush.msk.msra.mxu1 %vm132_vm1, %v720_v14  ;;  %vm94_vm12 = vcmp.eq.s32.totalorder %v50_v19, %v749_v8  ;;  %vm126_vm13 = vcmp.eq.s32.totalorder %v66_v20, %v749_v8  ;;  %vm91_vm14 = vcmp.eq.s32.totalorder %v48_v23, %v751_v9  ;;  %v46_v27 = vadd.s32 40, %v743_v1 }
  0x1c   :  { %609 = vmatpush.msk.msra.mxu2 %vm97_vm2, %v720_v14  ;;  %625 = vmatpush.msk.msra.mxu3 %vm129_vm3, %v720_v14  ;;  %vm123_vm15 = vcmp.eq.s32.totalorder %v64_v24, %v751_v9  ;;  %v62_v28 = vadd.s32 168, %v743_v1  ;;  %vm92_vm0 = vcmp.eq.s32.totalorder %v49_v21, %v749_v8  ;;  %vm124_vm1 = vcmp.eq.s32.totalorder %v65_v22, %v749_v8 }
  0x1d   :  { %576 = vmatpush.msk.msra.mxu0 %vm98_vm4, %v720_v14  ;;  %592 = vmatpush.msk.msra.mxu1 %vm130_vm5, %v720_v14  ;;  %vm89_vm2 = vcmp.eq.s32.totalorder %v47_v25, %v751_v9  ;;  %vm121_vm3 = vcmp.eq.s32.totalorder %v63_v26, %v751_v9  ;;  %v45_v29 = vadd.s32 32, %v743_v1  ;;  %v61_v30 = vadd.s32 160, %v743_v1 }
  0x1e   :  { %610 = vmatpush.msk.msra.mxu2 %vm95_vm6, %v720_v14  ;;  %626 = vmatpush.msk.msra.mxu3 %vm127_vm7, %v720_v14  ;;  %vm90_vm4 = vcmp.eq.s32.totalorder %v48_v23, %v749_v8  ;;  %vm122_vm5 = vcmp.eq.s32.totalorder %v64_v24, %v749_v8  ;;  %vm87_vm6 = vcmp.eq.s32.totalorder %v46_v27, %v751_v9  ;;  %v44_v31 = vadd.s32 24, %v743_v1 }
  0x1f   :  { %577 = vmatpush.msk.msra.mxu0 %vm96_vm8, %v720_v14  ;;  %593 = vmatpush.msk.msra.mxu1 %vm128_vm9, %v720_v14  ;;  %vm119_vm7 = vcmp.eq.s32.totalorder %v62_v28, %v751_v9  ;;  %v60_v32 = vadd.s32 152, %v743_v1  ;;  %vm88_vm8 = vcmp.eq.s32.totalorder %v47_v25, %v749_v8  ;;  %vm120_vm9 = vcmp.eq.s32.totalorder %v63_v26, %v749_v8 }
  0x20   :  { %611 = vmatpush.msk.msra.mxu2 %vm93_vm10, %v720_v14  ;;  %627 = vmatpush.msk.msra.mxu3 %vm125_vm11, %v720_v14  ;;  %vm85_vm10 = vcmp.eq.s32.totalorder %v45_v29, %v751_v9  ;;  %vm117_vm11 = vcmp.eq.s32.totalorder %v61_v30, %v751_v9  ;;  %v43_v33 = vadd.s32 16, %v743_v1  ;;  %v59_v34 = vadd.s32 144, %v743_v1 }
  0x21   :  { %578 = vmatpush.msk.msra.mxu0 %vm94_vm12, %v720_v14  ;;  %594 = vmatpush.msk.msra.mxu1 %vm126_vm13, %v720_v14  ;;  %vm86_vm12 = vcmp.eq.s32.totalorder %v46_v27, %v749_v8  ;;  %vm118_vm13 = vcmp.eq.s32.totalorder %v62_v28, %v749_v8  ;;  %v42_v35 = vadd.s32 8, %v743_v1  ;;  %v58_v36 = vadd.s32 136, %v743_v1 }
  0x22   :  { %612 = vmatpush.msk.msra.mxu2 %vm91_vm14, %v720_v14  ;;  %628 = vmatpush.msk.msra.mxu3 %vm123_vm15, %v720_v14  ;;  %vm83_vm14 = vcmp.eq.s32.totalorder %v44_v31, %v751_v9  ;;  %vm115_vm15 = vcmp.eq.s32.totalorder %v60_v32, %v751_v9  ;;  %v57_v37 = vadd.s32 128, %v743_v1 }
  0x23   :  { %579 = vmatpush.msk.msra.mxu0 %vm92_vm0, %v720_v14  ;;  %595 = vmatpush.msk.msra.mxu1 %vm124_vm1, %v720_v14  ;;  %vm84_vm0 = vcmp.eq.s32.totalorder %v45_v29, %v749_v8  ;;  %vm116_vm1 = vcmp.eq.s32.totalorder %v61_v30, %v749_v8 }
  0x24   :  { %613 = vmatpush.msk.msra.mxu2 %vm89_vm2, %v720_v14  ;;  %629 = vmatpush.msk.msra.mxu3 %vm121_vm3, %v720_v14  ;;  %vm81_vm2 = vcmp.eq.s32.totalorder %v43_v33, %v751_v9  ;;  %vm113_vm3 = vcmp.eq.s32.totalorder %v59_v34, %v751_v9 }
  0x25   :  { %580 = vmatpush.msk.msra.mxu0 %vm90_vm4, %v720_v14  ;;  %596 = vmatpush.msk.msra.mxu1 %vm122_vm5, %v720_v14  ;;  %vm82_vm4 = vcmp.eq.s32.totalorder %v44_v31, %v749_v8  ;;  %vm114_vm5 = vcmp.eq.s32.totalorder %v60_v32, %v749_v8 }
  0x26   :  { %614 = vmatpush.msk.msra.mxu2 %vm87_vm6, %v720_v14  ;;  %630 = vmatpush.msk.msra.mxu3 %vm119_vm7, %v720_v14  ;;  %vm79_vm6 = vcmp.eq.s32.totalorder %v42_v35, %v751_v9  ;;  %vm111_vm7 = vcmp.eq.s32.totalorder %v58_v36, %v751_v9 }
  0x27   :  { %581 = vmatpush.msk.msra.mxu0 %vm88_vm8, %v720_v14  ;;  %597 = vmatpush.msk.msra.mxu1 %vm120_vm9, %v720_v14  ;;  %vm80_vm8 = vcmp.eq.s32.totalorder %v43_v33, %v749_v8  ;;  %vm112_vm9 = vcmp.eq.s32.totalorder %v59_v34, %v749_v8 }
  0x28   :  { %615 = vmatpush.msk.msra.mxu2 %vm85_vm10, %v720_v14  ;;  %631 = vmatpush.msk.msra.mxu3 %vm117_vm11, %v720_v14  ;;  %vm77_vm10 = vcmp.eq.s32.totalorder %v743_v1, %v751_v9  ;;  %vm109_vm11 = vcmp.eq.s32.totalorder %v57_v37, %v751_v9 }
  0x29   :  { %582 = vmatpush.msk.msra.mxu0 %vm86_vm12, %v720_v14  ;;  %598 = vmatpush.msk.msra.mxu1 %vm118_vm13, %v720_v14  ;;  %vm78_vm12 = vcmp.eq.s32.totalorder %v42_v35, %v749_v8  ;;  %vm110_vm13 = vcmp.eq.s32.totalorder %v58_v36, %v749_v8 }
  0x2a   :  { %616 = vmatpush.msk.msra.mxu2 %vm83_vm14, %v720_v14  ;;  %632 = vmatpush.msk.msra.mxu3 %vm115_vm15, %v720_v14  ;;  %vm76_vm14 = vcmp.eq.s32.totalorder %v743_v1, %v749_v8  ;;  %vm108_vm15 = vcmp.eq.s32.totalorder %v57_v37, %v749_v8 }
  0x2b   :  { %583 = vmatpush.msk.msra.mxu0 %vm84_vm0, %v720_v14  ;;  %599 = vmatpush.msk.msra.mxu1 %vm116_vm1, %v720_v14  ;;  %vm486_vm0 = vcmask 1043456  }
  0x2c   :  { %617 = vmatpush.msk.msra.mxu2 %vm81_vm2, %v720_v14  ;;  %633 = vmatpush.msk.msra.mxu3 %vm113_vm3, %v720_v14 }
  0x2d   :  { %584 = vmatpush.msk.msra.mxu0 %vm82_vm4, %v720_v14  ;;  %600 = vmatpush.msk.msra.mxu1 %vm114_vm5, %v720_v14 }
  0x2e   :  { %618 = vmatpush.msk.msra.mxu2 %vm79_vm6, %v720_v14  ;;  %634 = vmatpush.msk.msra.mxu3 %vm111_vm7, %v720_v14 }
  0x2f   :  { %585 = vmatpush.msk.msra.mxu0 %vm80_vm8, %v720_v14  ;;  %601 = vmatpush.msk.msra.mxu1 %vm112_vm9, %v720_v14 }
  0x30   :  { %619 = vmatpush.msk.msra.mxu2 %vm77_vm10, %v720_v14  ;;  %635 = vmatpush.msk.msra.mxu3 %vm109_vm11, %v720_v14 }
  0x31   :  { %459 = vmatmul.f32.vlgmr.msra.gmra.mxu2 %v399_v38  ;;  %479 = vmatmul.f32.vlgmr.msra.gmra.mxu3 %v400_v39 }
  0x32   :  { %586 = vmatpush.msk.msra.mxu0 %vm78_vm12, %v720_v14  ;;  %602 = vmatpush.msk.msra.mxu1 %vm110_vm13, %v720_v14 }
  0x34   :  { %587 = vmatpush.msk.msra.mxu0 %vm76_vm14, %v720_v14  ;;  %603 = vmatpush.msk.msra.mxu1 %vm108_vm15, %v720_v14 }
  0x35   :  { %419 = vmatmul.f32.vlgmr.msra.gmra.mxu0 %v399_v38  ;;  %439 = vmatmul.f32.vlgmr.msra.gmra.mxu1 %v400_v39 }
  0xb2   :  { %v420_v40 = vpop.f32.mrf.mxu0  ;;  %v440_v41 = vpop.f32.mrf.mxu1 }
  0xb3   :  { %v441_v45 = vadd.f32 %v440_v41, %v420_v40 }
  0xb4   :  { %v460_v42 = vpop.f32.mrf.mxu2  ;;  %v480_v43 = vpop.f32.mrf.mxu3 }
  0xb5   :  { %v481_v44 = vadd.f32 %v480_v43, %v460_v42 }
  0xb7   :  { %v485_v46 = vrot.slane %v481_v44, 4 }
  0xb9   :  { %v487_v47 = vsel %vm486_vm0, %v441_v45, %v485_v46 }
  0xba   :  { %489 = vst [vmem:[#allocation8] sm:$0xff] %v487_v47 }
  0xbb   :  { %500 = dma.vmem_to_hbm [thread:$0]  %s496_s1, 128, %s498_s21, [#allocation5]  }
  0xbc   :  { %716 = dma.done.wait [#allocation5], 128  }
  0xbd   :  { %717 = vsyncadd [#allocation5], 4294967168 }
  0xbe   :  { %505 = vsyncpa [#allocation4], 1 }
  0xbf   :  { %506 = vsyncpa [#allocation7], 1 }
  0xc0   :  { %507 = vsyncpa [#allocation5], 1 }

</bundles_post_ra>
